<compile_context>
chip_gen: v5e
topology: v5e:2x2
jax: 0.10.0
libtpu: 0.0.40
codegen_flags: <defaults>
</compile_context>

<pallas_src>
import jax
import jax.numpy as jnp
from jax.experimental import pallas as pl
from jax.experimental.pallas import tpu as pltpu

_LANES = 128
_SUBLANES = 8
_TARGET_BLOCK_BYTES = 2 * 1024 * 1024  # ~2 MiB per block: good on v5e/v6e/v7x


def _pos_embed_kernel(x_ref, pe_ref, o_ref):
    # x_ref: (TB, F) tile, pe_ref: (1, F) resident embedding.
    # Implicit VPU broadcast of pe over the TB sublane rows.
    o_ref[...] = x_ref[...] + pe_ref[...]


def _choose_tb(batch, feat, itemsize):
    """Rows per block: ~2 MiB, multiple of 8 sublanes, clamped to batch."""
    rows = max(1, _TARGET_BLOCK_BYTES // (feat * itemsize))
    rows = max(_SUBLANES, (rows // _SUBLANES) * _SUBLANES)
    if batch <= rows:
        # Block equals the full batch extent -> always legal.
        return batch
    return rows


def position_embedding_forward(x, pos_embedding):
    """x: (N, C, H, W); pos_embedding: (H, W) or (C, H, W). Returns x + pe."""
    N, C, H, W = x.shape

    if pos_embedding.ndim == 2:
        assert pos_embedding.shape == (H, W)
        B, F = N * C, H * W
    elif pos_embedding.ndim == 3:
        assert pos_embedding.shape == (C, H, W)
        B, F = N, C * H * W
    else:
        raise ValueError("pos_embedding must be 2-D or 3-D")

    x2 = x.reshape(B, F)
    pe2 = pos_embedding.reshape(1, F).astype(x.dtype)

    # Lane-dense feature axis: pad to a multiple of 128 if needed so stores
    # are unmasked full-width vst (one-time wrapper pad is cheaper than masked
    # partial stores on every tile).
    F_pad = ((F + _LANES - 1) // _LANES) * _LANES
    if F_pad != F:
        x2 = jnp.pad(x2, ((0, 0), (0, F_pad - F)))
        pe2 = jnp.pad(pe2, ((0, 0), (0, F_pad - F)))

    itemsize = jnp.dtype(x.dtype).itemsize
    TB = _choose_tb(B, F_pad, itemsize)
    grid = (pl.cdiv(B, TB),)

    cost = pl.CostEstimate(
        flops=B * F,
        transcendentals=0,
        bytes_accessed=(2 * B * F_pad + F_pad) * itemsize,
    )

    out2 = pl.pallas_call(
        _pos_embed_kernel,
        out_shape=jax.ShapeDtypeStruct((B, F_pad), x.dtype),
        grid=grid,
        in_specs=[
            # Batch-blocked, lane-dense input tile.
            pl.BlockSpec((TB, F_pad), lambda i: (i, 0)),
            # Constant block index: embedding stays resident in VMEM.
            pl.BlockSpec((1, F_pad), lambda i: (0, 0)),
        ],
        out_specs=pl.BlockSpec((TB, F_pad), lambda i: (i, 0)),
        compiler_params=pltpu.CompilerParams(
            dimension_semantics=("parallel",),
        ),
        cost_estimate=cost,
    )(x2, pe2)

    if F_pad != F:
        out2 = out2[:, :F]
    return out2.reshape(N, C, H, W)


def init_position_embedding(shape, key):
    # PyTorch init: tanh(FloatTensor(shape)) on uninitialized memory.
    # Deterministic synthetic equivalent: tanh of a standard normal draw.
    return jnp.tanh(jax.random.normal(key, shape, dtype=jnp.float32))


if __name__ == "__main__":
    key = jax.random.PRNGKey(0)
    k_x, k_pe = jax.random.split(key)

    N, C, H, W = 2, 4, 16, 16
    x = jax.random.normal(k_x, (N, C, H, W), dtype=jnp.float32)
    pos_embedding = init_position_embedding((H, W), k_pe)

    out = position_embedding_forward(x, pos_embedding)
    out = jax.block_until_ready(out)

    # Reference check in plain JAX (same broadcasting semantics as PyTorch).
    ref = pos_embedding + x
    assert out.shape == (N, C, H, W)
    assert jnp.allclose(out, ref, atol=1e-6), "mismatch vs reference"

    print("KERNEL_OK")
</pallas_src>

<mosaic_0001>
module attributes {stable_mosaic.version = 11 : i64} {
  func.func @_pos_embed_kernel(%arg0: i32, %arg1: memref<8x256xf32, #tpu.memory_space<vmem>>, %arg2: memref<1x256xf32, #tpu.memory_space<vmem>>, %arg3: memref<8x256xf32, #tpu.memory_space<vmem>>) attributes {dimension_semantics = [#tpu.dimension_semantics<parallel>], iteration_bounds = array<i64: 1>, scalar_prefetch = 0 : i64, scratch_operands = 0 : i64, tpu.core_type = #tpu.core_type<tc>, window_params = [{transform_indices = @transform_0, window_bounds = array<i64: 8, 256>}, {pipeline_mode = #tpu.pipeline_mode<synchronous>, transform_indices = @transform_1, window_bounds = array<i64: 1, 256>}, {transform_indices = @transform_2, window_bounds = array<i64: 8, 256>}]} {
    %c0 = arith.constant 0 : index
    %c0_0 = arith.constant 0 : index
    %0 = vector.load %arg1[%c0, %c0_0] : memref<8x256xf32, #tpu.memory_space<vmem>>, vector<8x256xf32>
    %c0_1 = arith.constant 0 : index
    %c0_2 = arith.constant 0 : index
    %1 = vector.load %arg2[%c0_1, %c0_2] : memref<1x256xf32, #tpu.memory_space<vmem>>, vector<1x256xf32>
    %2 = vector.broadcast %1 : vector<1x256xf32> to vector<8x256xf32>
    %3 = arith.addf %0, %2 : vector<8x256xf32>
    %c0_3 = arith.constant 0 : index
    %c0_4 = arith.constant 0 : index
    %4 = vector.load %arg3[%c0_3, %c0_4] : memref<8x256xf32, #tpu.memory_space<vmem>>, vector<8x256xf32>
    tpu.vector_store %arg3[%c0_3, %c0_4], %3 {strides = array<i32>} : memref<8x256xf32, #tpu.memory_space<vmem>>, vector<8x256xf32>,
    return
  }
  func.func @transform_0(%arg0: i32) -> (i32, i32) {
    %c0_i32 = arith.constant 0 : i32
    %c0_i32_0 = arith.constant 0 : i32
    return %arg0, %c0_i32 : i32, i32
  }
  func.func @transform_1(%arg0: i32) -> (i32, i32) {
    %c0_i32 = arith.constant 0 : i32
    %c0_i32_0 = arith.constant 0 : i32
    %c0_i32_1 = arith.constant 0 : i32
    return %c0_i32, %c0_i32_0 : i32, i32
  }
  func.func @transform_2(%arg0: i32) -> (i32, i32) {
    %c0_i32 = arith.constant 0 : i32
    %c0_i32_0 = arith.constant 0 : i32
    return %arg0, %c0_i32 : i32, i32
  }
}

</mosaic_0001>

<bundles_post_ra>
// kernel: tpu_custom_call.1
= control target key start
LH: loop header
LB: loop body
LE: loop exit
PB: predicated region body
PF: predicated region fallthrough
CT: control target
= control target key end

     0   :  { %7 = vsyncpa [#allocation3], 0  ;;  %s178_s0 = inlined_call_operand.hbm [shape: f32[8,256], index: 0, kind: input, shape index: {}]   ;;  %s179_s1 = inlined_call_operand.hbm [shape: f32[1,256], index: 1, kind: input, shape index: {}]   ;;  %s180_s2 = inlined_call_operand.hbm [shape: f32[8,256], index: 2, kind: output, shape index: {}]  }
   0x1   :  { %8 = vsyncpa [#allocation6], 0 }
   0x2   :  { %9 = vsyncpa [#allocation4], 0  ;;  %s15_s11 = sshll.u32 %s178_s0, 4  ;;  %s151_s12 = smov [#allocation2]   ;;  %s16_s11 = int_to_ptr.hbm [resolvable:$true] %s15_s11 }
   0x3   :  { %s17_s13 = sshll.u32 %s151_s12, 4  ;;  %s26_s16 = sshll.u32 %s179_s1, 4  ;;  %s18_s13 = int_to_ptr.vmem [resolvable:$true] %s17_s13  ;;  %s27_s16 = int_to_ptr.hbm [resolvable:$true] %s26_s16 }
   0x4   :  { %20 = dma.hbm_to_vmem [thread:$0]  %s16_s11, 256, %s18_s13, [#allocation3]  }
   0x5   :  { %s152_s17 = smov [#allocation5]  }
   0x6   :  { %s28_s18 = sshll.u32 %s152_s17, 4  ;;  %s29_s18 = int_to_ptr.vmem [resolvable:$true] %s28_s18 }
   0x7   :  { %31 = dma.hbm_to_vmem [thread:$0]  %s27_s16, 32, %s29_s18, [#allocation6]  }
   0x8   :  { %145 = dma.done.wait [#allocation3], 256  }
   0x9   :  { %146 = vsyncadd [#allocation3], 4294967040 }
   0xa   :  { %147 = dma.done.wait [#allocation6], 32  }
   0xb   :  { %148 = vsyncadd [#allocation6], 4294967264  ;;  %v40_v0 = vld [vmem:[#allocation2] sm:$0xff]  ;;  %v42_v1 = vld [vmem:[#allocation5] sm:$0x3]  ;;  %s153_s0 = smov [#allocation7]  }
   0xc   :  { %v41_v2 = vld [vmem:[#allocation2 + $0x8] sm:$0xff]  ;;  %v44_v3 = vperm.slane %v42_v1, 0  ;;  %v45_v4 = vperm.slane %v42_v1, 1  ;;  %s57_s19 = sshll.u32 %s153_s0, 4  ;;  %s59_s1 = sshll.u32 %s180_s2, 4  ;;  %s58_s19 = int_to_ptr.vmem [resolvable:$true] %s57_s19  ;;  %s60_s1 = int_to_ptr.hbm [resolvable:$true] %s59_s1 }
   0xe   :  { %v48_v5 = vadd.f32 %v44_v3, %v40_v0  ;;  %v49_v6 = vadd.f32 %v45_v4, %v41_v2 }
  0x10   :  { %50 = vst [vmem:[#allocation7] sm:$0xff] %v48_v5 }
  0x11   :  { %51 = vst [vmem:[#allocation7 + $0x8] sm:$0xff] %v49_v6 }
  0x12   :  { %62 = dma.vmem_to_hbm [thread:$0]  %s58_s19, 256, %s60_s1, [#allocation4]  }
  0x13   :  { %149 = dma.done.wait [#allocation4], 256  }
  0x14   :  { %150 = vsyncadd [#allocation4], 4294967040 }
  0x15   :  { %67 = vsyncpa [#allocation3], 1 }
  0x16   :  { %68 = vsyncpa [#allocation6], 1 }
  0x17   :  { %69 = vsyncpa [#allocation4], 1 }

</bundles_post_ra>
